<compile_context>
chip_gen: v6e
topology: v6e:2x2x1
jax: 0.10.0
libtpu: 0.0.40
codegen_flags: <defaults>
</compile_context>

<pallas_src>
import functools
import math

import jax
import jax.numpy as jnp
from jax.experimental import pallas as pl
from jax.experimental.pallas import tpu as pltpu


def _fork_attention_kernel(x_ref, wcat_ref, bcat_ref, walt_ref, balt_ref, o_ref,
                           *, mxu_dtype):
    cast = (lambda a: a.astype(mxu_dtype)) if mxu_dtype is not None else (lambda a: a)
    Bt, C, E = x_ref.shape

    x = x_ref[...]                                        # (Bt, C, E)

    # --- fused fc + vfc projection: one big MXU matmul over all Bt*C rows ---
    x2d = x.reshape(Bt * C, E)
    proj = jnp.dot(x2d, wcat_ref[...], preferred_element_type=jnp.float32)
    proj = proj + bcat_ref[...]                           # (Bt*C, 2E), f32
    y = proj[:, :E].reshape(Bt, C, E)                     # fc(x)
    vx = proj[:, E:].reshape(Bt, C, E)                    # vfc(x)

    # --- alt_fc over the context axis, without materializing x^T ---
    # yxT[b, k, e] = sum_c W_alt[k, c] * x[b, c, e] + b_alt[k]   (== yx[b, e, k])
    walt_b = jnp.broadcast_to(walt_ref[...], (Bt, C, C))
    yxT = jnp.einsum('bkc,bce->bke', cast(walt_b), cast(x),
                     preferred_element_type=jnp.float32)
    yxT = yxT + balt_ref[...]                             # (Bt, C, E), bias over k

    # --- attention scores: attn[b,c,k] = sum_e y[b,c,e] * yx[b,e,k] ---
    s = jnp.einsum('bce,bke->bck', cast(y), cast(yxT),
                   preferred_element_type=jnp.float32)
    s = s * (1.0 / math.sqrt(C))                          # scale by 1/sqrt(attn.shape[-1])

    # --- numerically stable softmax over the last axis (kept in f32) ---
    s = s - jnp.max(s, axis=-1, keepdims=True)
    p = jnp.exp(s)
    p = p * pl.reciprocal(jnp.sum(p, axis=-1, keepdims=True), approx=False)

    # --- output: out[b,c,e] = sum_k p[b,c,k] * vx[b,k,e] ---
    out = jnp.einsum('bck,bke->bce', cast(p), cast(vx),
                     preferred_element_type=jnp.float32)
    o_ref[...] = out.astype(o_ref.dtype)


def _pick_batch_tile(B, C, target_rows=512):
    """Largest divisor of B such that (Bt * C) is around `target_rows` MXU rows."""
    want = max(1, min(B, max(1, target_rows // max(C, 1))))
    for bt in range(want, 0, -1):
        if B % bt == 0:
            return bt
    return 1


def fork_attention(x, w_fc, b_fc, w_alt, b_alt, w_v, b_v, *,
                   batch_tile=None, mxu_dtype=None):
    """x: (B, C, E). Weights in PyTorch Linear layout (out_features, in_features).

    mxu_dtype: optionally jnp.bfloat16 to run the MXU matmuls in bf16 (v6e/v7x);
    softmax and accumulation stay in f32.  None keeps everything f32.
    """
    B, C, E = x.shape

    # One-time weight prep outside the kernel (amortized over the whole batch):
    #  * fuse fc & vfc into a single already-transposed (E, 2E) matmul operand,
    #  * reshape biases so they broadcast directly against kernel intermediates.
    w_cat = jnp.concatenate([w_fc.T, w_v.T], axis=1)       # (E, 2E): x @ w_cat = [fc | vfc]
    b_cat = jnp.concatenate([b_fc, b_v]).reshape(1, 2 * E)  # (1, 2E)
    b_alt_col = b_alt.reshape(C, 1)                         # (C, 1), broadcast over e

    x_in = x
    w_alt_in = w_alt
    if mxu_dtype is not None:
        x_in = x_in.astype(mxu_dtype)
        w_cat = w_cat.astype(mxu_dtype)
        w_alt_in = w_alt_in.astype(mxu_dtype)

    Bt = batch_tile if batch_tile is not None else _pick_batch_tile(B, C)
    if B % Bt != 0:
        raise ValueError(f"batch_tile={Bt} must divide batch size {B}")
    grid = (B // Bt,)

    kernel = functools.partial(_fork_attention_kernel, mxu_dtype=mxu_dtype)
    const2d = lambda shape: pl.BlockSpec(shape, lambda b: (0, 0))

    return pl.pallas_call(
        kernel,
        out_shape=jax.ShapeDtypeStruct((B, C, E), x.dtype),
        grid_spec=pltpu.PrefetchScalarGridSpec(
            num_scalar_prefetch=0,
            grid=grid,
            in_specs=[
                pl.BlockSpec((Bt, C, E), lambda b: (b, 0, 0)),   # x: Bt samples per step
                const2d((E, 2 * E)),                             # [W_fc^T | W_v^T]
                const2d((1, 2 * E)),                             # [b_fc | b_v]
                const2d((C, C)),                                 # W_alt
                const2d((C, 1)),                                 # b_alt (column)
            ],
            out_specs=pl.BlockSpec((Bt, C, E), lambda b: (b, 0, 0)),
        ),
        compiler_params=pltpu.CompilerParams(
            dimension_semantics=("parallel",)),   # batch axis shards across cores
    )(x_in, w_cat, b_cat, w_alt_in, b_alt_col)


def fork_attention_ref(x, w_fc, b_fc, w_alt, b_alt, w_v, b_v):
    """Pure-JAX reference matching the PyTorch forward."""
    C = x.shape[1]
    y = jnp.einsum('bce,fe->bcf', x, w_fc) + b_fc
    xx = jnp.swapaxes(x, 1, 2)                       # (B, E, C)
    yx = jnp.einsum('bec,kc->bek', xx, w_alt) + b_alt
    attn = jnp.einsum('bce,bek->bck', y, yx)
    attn = jax.nn.softmax(attn / math.sqrt(C), axis=-1)
    vx = jnp.einsum('bce,fe->bcf', x, w_v) + b_v
    return jnp.einsum('bck,bke->bce', attn, vx)


if __name__ == "__main__":
    B, C, E = 2, 8, 32   # batch, context_size, embed_size
    key = jax.random.PRNGKey(0)
    kx, k1, k2, k3, k4, k5, k6 = jax.random.split(key, 7)

    x = jax.random.normal(kx, (B, C, E), dtype=jnp.float32)

    # PyTorch Linear init style: U(-1/sqrt(fan_in), 1/sqrt(fan_in)).
    lim_e = 1.0 / math.sqrt(E)
    lim_c = 1.0 / math.sqrt(C)
    w_fc = jax.random.uniform(k1, (E, E), jnp.float32, -lim_e, lim_e)
    b_fc = jax.random.uniform(k2, (E,), jnp.float32, -lim_e, lim_e)
    w_alt = jax.random.uniform(k3, (C, C), jnp.float32, -lim_c, lim_c)
    b_alt = jax.random.uniform(k4, (C,), jnp.float32, -lim_c, lim_c)
    w_v = jax.random.uniform(k5, (E, E), jnp.float32, -lim_e, lim_e)
    b_v = jax.random.uniform(k6, (E,), jnp.float32, -lim_e, lim_e)

    out = fork_attention(x, w_fc, b_fc, w_alt, b_alt, w_v, b_v)
    out = jax.block_until_ready(out)

    ref = fork_attention_ref(x, w_fc, b_fc, w_alt, b_alt, w_v, b_v)
    assert out.shape == (B, C, E)
    assert jnp.allclose(out, ref, atol=5e-5, rtol=5e-5), "mismatch vs reference"

    print("KERNEL_OK")
</pallas_src>

<mosaic_0001>
module attributes {stable_mosaic.version = 11 : i64} {
  func.func @_fork_attention_kernel(%arg0: i32, %arg1: memref<2x8x32xf32, #tpu.memory_space<vmem>>, %arg2: memref<32x64xf32, #tpu.memory_space<vmem>>, %arg3: memref<1x64xf32, #tpu.memory_space<vmem>>, %arg4: memref<8x8xf32, #tpu.memory_space<vmem>>, %arg5: memref<8x1xf32, #tpu.memory_space<vmem>>, %arg6: memref<2x8x32xf32, #tpu.memory_space<vmem>>) attributes {dimension_semantics = [#tpu.dimension_semantics<parallel>], iteration_bounds = array<i64: 1>, scalar_prefetch = 0 : i64, scratch_operands = 0 : i64, tpu.core_type = #tpu.core_type<tc>, window_params = [{transform_indices = @transform_0, window_bounds = array<i64: 2, 8, 32>}, {pipeline_mode = #tpu.pipeline_mode<synchronous>, transform_indices = @transform_1, window_bounds = array<i64: 32, 64>}, {pipeline_mode = #tpu.pipeline_mode<synchronous>, transform_indices = @transform_2, window_bounds = array<i64: 1, 64>}, {pipeline_mode = #tpu.pipeline_mode<synchronous>, transform_indices = @transform_3, window_bounds = array<i64: 8, 8>}, {pipeline_mode = #tpu.pipeline_mode<synchronous>, transform_indices = @transform_4, window_bounds = array<i64: 8, 1>}, {transform_indices = @transform_5, window_bounds = array<i64: 2, 8, 32>}]} {
    %c0 = arith.constant 0 : index
    %c0_0 = arith.constant 0 : index
    %c0_1 = arith.constant 0 : index
    %0 = vector.load %arg1[%c0, %c0_0, %c0_1] : memref<2x8x32xf32, #tpu.memory_space<vmem>>, vector<2x8x32xf32>
    %1 = vector.shape_cast %0 : vector<2x8x32xf32> to vector<16x32xf32>
    %c0_2 = arith.constant 0 : index
    %c0_3 = arith.constant 0 : index
    %2 = vector.load %arg2[%c0_2, %c0_3] : memref<32x64xf32, #tpu.memory_space<vmem>>, vector<32x64xf32>
    %cst = arith.constant dense<0.000000e+00> : vector<16x64xf32>
    %3 = tpu.matmul %1, %2, %cst {dimension_numbers = #tpu.dot_dimension_numbers<[1], [0], [0], [1], [0, 0, 1, 1], [], []>} : vector<16x32xf32>, vector<32x64xf32>, vector<16x64xf32> -> vector<16x64xf32>
    %c0_4 = arith.constant 0 : index
    %c0_5 = arith.constant 0 : index
    %4 = vector.load %arg3[%c0_4, %c0_5] : memref<1x64xf32, #tpu.memory_space<vmem>>, vector<1x64xf32>
    %5 = vector.broadcast %4 : vector<1x64xf32> to vector<16x64xf32>
    %6 = arith.addf %3, %5 : vector<16x64xf32>
    %7 = vector.extract_strided_slice %6 {offsets = [0, 0], sizes = [16, 32], strides = [1, 1]} : vector<16x64xf32> to vector<16x32xf32>
    %8 = vector.shape_cast %7 : vector<16x32xf32> to vector<2x8x32xf32>
    %9 = vector.extract_strided_slice %6 {offsets = [0, 32], sizes = [16, 32], strides = [1, 1]} : vector<16x64xf32> to vector<16x32xf32>
    %10 = vector.shape_cast %9 : vector<16x32xf32> to vector<2x8x32xf32>
    %c0_6 = arith.constant 0 : index
    %c0_7 = arith.constant 0 : index
    %11 = vector.load %arg4[%c0_6, %c0_7] : memref<8x8xf32, #tpu.memory_space<vmem>>, vector<8x8xf32>
    %12 = vector.shape_cast %11 : vector<8x8xf32> to vector<1x8x8xf32>
    %13 = vector.broadcast %12 : vector<1x8x8xf32> to vector<2x8x8xf32>
    "tpu.trace_start"() <{level = 10 : i32, message = "bkc,bce->bke"}> : () -> ()
    %cst_8 = arith.constant dense<0.000000e+00> : vector<2x8x32xf32>
    %14 = tpu.matmul %13, %0, %cst_8 {dimension_numbers = #tpu.dot_dimension_numbers<[2], [1], [1], [2], [0, 0, 0, 1, 1, 2], [0], [0]>} : vector<2x8x8xf32>, vector<2x8x32xf32>, vector<2x8x32xf32> -> vector<2x8x32xf32>
    "tpu.trace_stop"() : () -> ()
    %c0_9 = arith.constant 0 : index
    %c0_10 = arith.constant 0 : index
    %15 = vector.load %arg5[%c0_9, %c0_10] : memref<8x1xf32, #tpu.memory_space<vmem>>, vector<8x1xf32>
    %16 = vector.shape_cast %15 : vector<8x1xf32> to vector<1x8x1xf32>
    %17 = vector.broadcast %16 : vector<1x8x1xf32> to vector<2x8x32xf32>
    %18 = arith.addf %14, %17 : vector<2x8x32xf32>
    "tpu.trace_start"() <{level = 10 : i32, message = "bce,bke->bck"}> : () -> ()
    %cst_11 = arith.constant dense<0.000000e+00> : vector<2x8x8xf32>
    %19 = tpu.matmul %8, %18, %cst_11 {dimension_numbers = #tpu.dot_dimension_numbers<[2], [2], [1], [1], [0, 0, 0, 1, 1, 1], [0], [0]>} : vector<2x8x32xf32>, vector<2x8x32xf32>, vector<2x8x8xf32> -> vector<2x8x8xf32>
    "tpu.trace_stop"() : () -> ()
    %cst_12 = arith.constant 0.353553385 : f32
    %20 = vector.broadcast %cst_12 : f32 to vector<2x8x8xf32>
    %21 = arith.mulf %19, %20 : vector<2x8x8xf32>
    %cst_13 = arith.constant dense<0xFF800000> : vector<2x8xf32>
    %22 = vector.multi_reduction <maximumf>, %21, %cst_13 [2] : vector<2x8x8xf32> to vector<2x8xf32>
    %23 = vector.shape_cast %22 : vector<2x8xf32> to vector<2x8x1xf32>
    %24 = vector.broadcast %23 : vector<2x8x1xf32> to vector<2x8x8xf32>
    %25 = arith.subf %21, %24 : vector<2x8x8xf32>
    %26 = math.exp %25 : vector<2x8x8xf32>
    %cst_14 = arith.constant dense<0.000000e+00> : vector<2x8xf32>
    %27 = vector.multi_reduction <add>, %26, %cst_14 [2] : vector<2x8x8xf32> to vector<2x8xf32>
    %28 = vector.shape_cast %27 : vector<2x8xf32> to vector<2x8x1xf32>
    %29 = tpu.reciprocal %28 : vector<2x8x1xf32> -> vector<2x8x1xf32>
    %30 = vector.broadcast %29 : vector<2x8x1xf32> to vector<2x8x8xf32>
    %31 = arith.mulf %26, %30 : vector<2x8x8xf32>
    "tpu.trace_start"() <{level = 10 : i32, message = "bck,bke->bce"}> : () -> ()
    %cst_15 = arith.constant dense<0.000000e+00> : vector<2x8x32xf32>
    %32 = tpu.matmul %31, %10, %cst_15 {dimension_numbers = #tpu.dot_dimension_numbers<[2], [1], [1], [2], [0, 0, 0, 1, 1, 2], [0], [0]>} : vector<2x8x8xf32>, vector<2x8x32xf32>, vector<2x8x32xf32> -> vector<2x8x32xf32>
    "tpu.trace_stop"() : () -> ()
    %c0_16 = arith.constant 0 : index
    %c0_17 = arith.constant 0 : index
    %c0_18 = arith.constant 0 : index
    %33 = vector.load %arg6[%c0_16, %c0_17, %c0_18] : memref<2x8x32xf32, #tpu.memory_space<vmem>>, vector<2x8x32xf32>
    tpu.vector_store %arg6[%c0_16, %c0_17, %c0_18], %32 {strides = array<i32>} : memref<2x8x32xf32, #tpu.memory_space<vmem>>, vector<2x8x32xf32>,
    return
  }
  func.func @transform_0(%arg0: i32) -> (i32, i32, i32) {
    %c0_i32 = arith.constant 0 : i32
    %c0_i32_0 = arith.constant 0 : i32
    %c0_i32_1 = arith.constant 0 : i32
    return %arg0, %c0_i32, %c0_i32_0 : i32, i32, i32
  }
  func.func @transform_1(%arg0: i32) -> (i32, i32) {
    %c0_i32 = arith.constant 0 : i32
    %c0_i32_0 = arith.constant 0 : i32
    %c0_i32_1 = arith.constant 0 : i32
    return %c0_i32, %c0_i32_0 : i32, i32
  }
  func.func @transform_2(%arg0: i32) -> (i32, i32) {
    %c0_i32 = arith.constant 0 : i32
    %c0_i32_0 = arith.constant 0 : i32
    %c0_i32_1 = arith.constant 0 : i32
    return %c0_i32, %c0_i32_0 : i32, i32
  }
  func.func @transform_3(%arg0: i32) -> (i32, i32) {
    %c0_i32 = arith.constant 0 : i32
    %c0_i32_0 = arith.constant 0 : i32
    %c0_i32_1 = arith.constant 0 : i32
    return %c0_i32, %c0_i32_0 : i32, i32
  }
  func.func @transform_4(%arg0: i32) -> (i32, i32) {
    %c0_i32 = arith.constant 0 : i32
    %c0_i32_0 = arith.constant 0 : i32
    %c0_i32_1 = arith.constant 0 : i32
    return %c0_i32, %c0_i32_0 : i32, i32
  }
  func.func @transform_5(%arg0: i32) -> (i32, i32, i32) {
    %c0_i32 = arith.constant 0 : i32
    %c0_i32_0 = arith.constant 0 : i32
    %c0_i32_1 = arith.constant 0 : i32
    return %arg0, %c0_i32, %c0_i32_0 : i32, i32, i32
  }
}

</mosaic_0001>

<bundles_post_ra>
// kernel: tpu_custom_call.1
= control target key start
LH: loop header
LB: loop body
LE: loop exit
PB: predicated region body
PF: predicated region fallthrough
CT: control target
= control target key end

     0   :  { %10 = vsyncpa [#allocation3], 0  ;;  %s885_s0 = inlined_call_operand.hbm [shape: f32[2,8,32], index: 0, kind: input, shape index: {}]   ;;  %s886_s1 = inlined_call_operand.hbm [shape: f32[32,64], index: 1, kind: input, shape index: {}]   ;;  %s887_s2 = inlined_call_operand.vmem [shape: f32[1,64], index: 2, kind: input, shape index: {}]   ;;  %s888_s3 = inlined_call_operand.vmem [shape: f32[8,8], index: 3, kind: input, shape index: {}]   ;;  %s889_s4 = inlined_call_operand.vmem [shape: f32[8,1], index: 4, kind: input, shape index: {}]   ;;  %s890_s5 = inlined_call_operand.hbm [shape: f32[2,8,32], index: 5, kind: output, shape index: {}]  }
   0x1   :  { %11 = vsyncpa [#allocation6], 0 }
   0x2   :  { %12 = vsyncpa [#allocation4], 0  ;;  %s797_s18 = smov [#allocation2]  }
   0x3   :  { %s18_s19 = sshll.u32 %s797_s18, 4  ;;  %s19_s19 = int_to_ptr.vmem [resolvable:$true] %s18_s19 }
   0x4   :  { %s739_s20 = scalar_lea.vmem %s19_s19, 256  ;;  %p744_p1 = scmp.lt.s32.totalorder %s19_s19, %s19_s19 }
   0x5   :  { %p740_p0 = scmp.ne.s32.totalorder %s19_s19, %s739_s20  ;;  %p745_p2 = scmp.lt.s32.totalorder %s739_s20, %s739_s20 }
   0x7   :  { %p746_p3 = por %p745_p2, %p744_p1 }
   0x9   :  { %p747_p4 = pnand %p746_p3, %p740_p0 }
   0xb   :  { %750 = shalt.err (!%p747_p4)
}
   0xc   :  { %s798_s21 = smov 128   ;;  %s799_s22 = smov 8  }
   0xd   :  { %24 = dma.hbm_to_vmem [thread:$0]  %s885_s0, 256, %s19_s19, [#allocation3], %s798_s21, %s798_s21, %s799_s22  }
   0xe   :  { %s800_s25 = smov [#allocation5]  }
   0xf   :  { %s30_s26 = sshll.u32 %s800_s25, 4  ;;  %s31_s26 = int_to_ptr.vmem [resolvable:$true] %s30_s26 }
  0x10   :  { %s759_s27 = scalar_lea.vmem %s31_s26, 512  ;;  %p764_p6 = scmp.lt.s32.totalorder %s31_s26, %s31_s26 }
  0x11   :  { %p760_p5 = scmp.ne.s32.totalorder %s31_s26, %s759_s27  ;;  %p765_p7 = scmp.lt.s32.totalorder %s759_s27, %s759_s27 }
  0x13   :  { %p766_p8 = por %p765_p7, %p764_p6 }
  0x15   :  { %p767_p9 = pnand %p766_p8, %p760_p5 }
  0x17   :  { %770 = shalt.err (!%p767_p9)
}
  0x18   :  { %36 = dma.hbm_to_vmem [thread:$0]  %s886_s1, 512, %s31_s26, [#allocation6], %s798_s21, %s798_s21, %s799_s22  }
  0x19   :  { %791 = dma.done.wait [#allocation3], 256  }
  0x1a   :  { %792 = vsyncadd [#allocation3], 4294967040 }
  0x1b   :  { %793 = dma.done.wait [#allocation6], 512  }
  0x1c   :  { %794 = vsyncadd [#allocation6], 4294966784  ;;  %v801_v0 = vmov 0.0   ;;  %vm802_vm0 = vmmov 0   ;;  %v803_v1 = vmov 0   ;;  %vm151_vm1 = vcmask 64512  }
  0x1d   :  { %683 = vmatprep.subr.mxu1 %v801_v0  ;;  %685 = vmatprep.mubr.msk.f32.mxu1 %vm802_vm0, %v801_v0  ;;  %v54_v2 = vld [vmem:[#allocation5 + $0x18] sm:$0xff]  ;;  %v49_v3 = vld [vmem:[#allocation2] sm:$0xff]  ;;  %v52_v7 = vld [vmem:[#allocation5 + $0x8] sm:$0xff]  ;;  %vm62_vm2 = vcmask 261120   ;;  %s805_s7 = smov [#allocation7]  }
  0x1e   :  { %722 = vset.pattern.permute.xlu0 %v803_v1  ;;  %v144_v4 = vld [vmem:[%s888_s3] sm:$0xff]  ;;  %672 = vmatprep.subr.mxu0 %v54_v2  ;;  %v50_v6 = vld [vmem:[#allocation2 + $0x8] sm:$0xff]  ;;  %v51_v8 = vld [vmem:[#allocation5] sm:$0xff]  ;;  %s630_s8 = sshll.u32 %s805_s7, 4  ;;  %s631_s8 = int_to_ptr.vmem [resolvable:$true] %s630_s8 }
  0x1f   :  { %684 = vmatpush3.msra.mxu1 %v49_v3  ;;  %v53_v5 = vld [vmem:[#allocation5 + $0x10] sm:$0xff]  ;;  %673 = vmatpush3.msra.mxu0 %v54_v2  ;;  %s771_s9 = scalar_lea.vmem %s631_s8, 256  ;;  %p776_p11 = scmp.lt.s32.totalorder %s631_s8, %s631_s8 }
  0x20   :  { %686 = vmatmul.mubr.msk.f32.vlgmr.msra.gmra.mxu1 %vm151_vm1, %v144_v4  ;;  %688 = vmatprep.subr.mxu1 %v801_v0  ;;  %v145_v9 = vld [vmem:[%s889_s4] sm:$0xff]  ;;  %p772_p10 = scmp.ne.s32.totalorder %s631_s8, %s771_s9  ;;  %p777_p12 = scmp.lt.s32.totalorder %s771_s9, %s771_s9 }
  0x21   :  { %674 = vmatprep.subr.mxu0 %v53_v5  ;;  %689 = vmatpush3.msra.mxu1 %v50_v6  ;;  %v643_v16 = vld [vmem:[%s887_s2] ss:$0 sm:$0xff]  ;;  %s804_s2 = smov 96  }
  0x22   :  { %675 = vmatpush3.msra.mxu0 %v53_v5  ;;  %690 = vmatprep.mubr.msk.f32.mxu1 %vm802_vm0, %v801_v0  ;;  %p778_p13 = por %p777_p12, %p776_p11 }
  0x23   :  { %676 = vmatprep.subr.mxu0 %v52_v7  ;;  %680 = vmatprep.mubr.msk.f32.mxu0 %vm62_vm2, %v49_v3 }
  0x24   :  { %677 = vmatpush3.msra.mxu0 %v52_v7  ;;  %691 = vmatmul.mubr.msk.f32.vlgmr.msra.gmra.mxu1 %vm151_vm1, %v144_v4  ;;  %p779_p0 = pnand %p778_p13, %p772_p10 }
  0x25   :  { %678 = vmatprep.subr.mxu0 %v51_v8  ;;  %148 = vperm.xlu0 %722, %v145_v9  }
  0x26   :  { %679 = vmatpush3.msra.mxu0 %v51_v8  ;;  %693 = vmatprep.subr.mxu1 %v801_v0 }
  0x27   :  { %681 = vmatmul.mubr.msk.f32.vlgmr.msra.gmra.mxu0 %vm62_vm2, %v50_v6  ;;  %698 = vmatprep.subr.mxu0 %v801_v0 }
  0x28   :  { %700 = vmatprep.mubr.msk.f32.mxu0 %vm802_vm0, %v801_v0  ;;  %695 = vmatprep.mubr.msk.f32.mxu1 %vm802_vm0, %v801_v0 }
  0xa0   :  { %v149_v10 = vpop.permute.xlu0 %148 }
  0xe0   :  { %v221_v11 = vpop.f32.mrf.mxu1 }
  0xe1   :  { %v222_v12 = vadd.f32 %v221_v11, %v149_v10 }
  0xe2   :  { %v687_v13 = vpop.f32.mrf.mxu1 }
  0xe3   :  { %694 = vmatpush3.xpose.msk.msra.mxu1 %vm62_vm2, %v222_v12 }
  0xe4   :  { %v291_v14 = vpop.f32.mrf.mxu1  ;;  %703 = vmatprep.subr.mxu1 %v801_v0 }
  0xe5   :  { %v292_v15 = vadd.f32 %v291_v14, %v149_v10 }
  0xe6   :  { %v692_v17 = vpop.f32.mrf.mxu1 }
  0xe7   :  { %v682_v18 = vpop.f32.mrf.mxu0  ;;  %699 = vmatpush3.xpose.msk.msra.mxu0 %vm62_vm2, %v292_v15 }
  0xe8   :  { %v141_v19 = vadd.f32 %v682_v18, %v643_v16  ;;  %708 = vmatprep.subr.mxu0 %v801_v0 }
  0xe9   :  { %v135_v20 = vpop.f32.mrf.mxu0 }
  0xea   :  { %v136_v21 = vadd.f32 %v643_v16, %v135_v20  ;;  %701 = vmatmul.mubr.msk.f32.vlgmr.msra.gmra.mxu0 %vm62_vm2, %v141_v19 }
  0xeb   :  { %710 = vmatprep.mubr.msk.f32.mxu0 %vm802_vm0, %v801_v0 }
  0xec   :  { %696 = vmatmul.mubr.msk.f32.vlgmr.msra.gmra.mxu1 %vm62_vm2, %v136_v21 }
  0xed   :  { %705 = vmatprep.mubr.msk.f32.mxu1 %vm802_vm0, %v801_v0 }
 0x1aa   :  { %v443_v22 = vpop.f32.mrf.mxu0 }
 0x1ab   :  { %v448_v23 = vmul.f32 0.35355338, %v443_v22 }
 0x1ac   :  { %v367_v24 = vpop.f32.mrf.mxu1  ;;  %v702_v25 = vpop.f32.mrf.mxu0 }
 0x1ad   :  { %v447_v26 = vmul.f32 0.35355338, %v367_v24  ;;  %v452_v27 = vsel %vm151_vm1, %v448_v23, -inf }
 0x1ae   :  { %453 = vmax.xlane.f32.xlu1 %v452_v27  ;;  %v697_v28 = vpop.f32.mrf.mxu1 }
 0x1af   :  { %v449_v29 = vsel %vm151_vm1, %v447_v26, -inf }
 0x1b0   :  { %450 = vmax.xlane.f32.xlu0 %v449_v29 }
 0x1bf   :  { %471 = vrot.lane.b32.xlu1 %v136_v21, %s804_s2 }
 0x237   :  { %v454_v30 = vpop.xlane.xlu1 %453 }
 0x238   :  { %v456_v31 = vsub.f32 %v448_v23, %v454_v30 }
 0x239   :  { %v451_v32 = vpop.xlane.xlu0 %450 }
 0x23a   :  { %v459_v33 = vmul.f32 1.442695, %v456_v31  ;;  %v455_v34 = vsub.f32 %v447_v26, %v451_v32 }
 0x23b   :  { %v472_v35 = vpop.permute.xlu1 %471 }
 0x23c   :  { %723 = vpow2.f32 %v459_v33  ;;  %v457_v36 = vmul.f32 1.442695, %v455_v34  ;;  %704 = vmatpush3.msra.mxu1 %v472_v35 }
 0x23e   :  { %725 = vpow2.f32 %v457_v36 }
 0x249   :  { %v724_v37 = vpop.eup %723 }
 0x24a   :  { %v464_v38 = vsel %vm151_vm1, %v724_v37, 0.0 }
 0x24b   :  { %v726_v39 = vpop.eup %725  ;;  %465 = vadd.xlane.f32.xlu1 %v464_v38 }
 0x24c   :  { %v461_v40 = vsel %vm151_vm1, %v726_v39, 0.0 }
 0x24f   :  { %462 = vadd.xlane.f32.xlu1 %v461_v40 }
 0x260   :  { %547 = vrot.lane.b32.xlu1 %v141_v19, %s804_s2 }
 0x2d4   :  { %v466_v41 = vpop.xlane.xlu1 %465 }
 0x2d5   :  { %727 = vrcp.f32 %v466_v41 }
 0x2d8   :  { %v463_v42 = vpop.xlane.xlu1 %462 }
 0x2d9   :  { %729 = vrcp.f32 %v463_v42 }
 0x2dc   :  { %v548_v43 = vpop.permute.xlu1 %547 }
 0x2dd   :  { %709 = vmatpush3.msra.mxu0 %v548_v43 }
 0x2e2   :  { %v728_v44 = vpop.eup %727 }
 0x2e3   :  { %v470_v45 = vmul.f32 %v728_v44, %v724_v37 }
 0x2e5   :  { %711 = vmatmul.mubr.msk.f32.vlgmr.msra.gmra.mxu0 %vm151_vm1, %v470_v45 }
 0x2e6   :  { %v730_v46 = vpop.eup %729 }
 0x2e7   :  { %v469_v47 = vmul.f32 %v730_v46, %v726_v39 }
 0x2e9   :  { %706 = vmatmul.mubr.msk.f32.vlgmr.msra.gmra.mxu1 %vm151_vm1, %v469_v47 }
 0x3a5   :  { %v619_v48 = vpop.f32.mrf.mxu0 }
 0x3a6   :  { %624 = vst.msk [vmem:[#allocation7 + $0x8] sm:$0xff] %vm62_vm2, %v619_v48 }
 0x3a7   :  { %v712_v49 = vpop.f32.mrf.mxu0 }
 0x3a9   :  { %v543_v50 = vpop.f32.mrf.mxu1 }
 0x3aa   :  { %623 = vst.msk [vmem:[#allocation7] sm:$0xff] %vm62_vm2, %v543_v50 }
 0x3ab   :  { %v707_v51 = vpop.f32.mrf.mxu1 }
 0x3ac   :  { %782 = shalt.err (!%p779_p0)
}
 0x3ad   :  { %636 = dma.vmem_to_hbm [thread:$0]  %s631_s8, 256, %s890_s5, [#allocation4], %s798_s21, %s798_s21, %s799_s22  }
 0x3ae   :  { %795 = dma.done.wait [#allocation4], 256  }
 0x3af   :  { %796 = vsyncadd [#allocation4], 4294967040 }
 0x3b0   :  { %640 = vsyncpa [#allocation3], 1 }
 0x3b1   :  { %641 = vsyncpa [#allocation6], 1 }
 0x3b2   :  { %642 = vsyncpa [#allocation4], 1 }

</bundles_post_ra>
